<compile_context>
chip_gen: v6e
topology: v6e:2x2x1
jax: 0.10.0
libtpu: 0.0.40
codegen_flags: <defaults>
</compile_context>

<pallas_src>
import functools

import numpy as np
import jax
import jax.numpy as jnp
from jax.experimental import pallas as pl
from jax.experimental.pallas import tpu as pltpu

N_QUBITS = 8
N_STATES = 2 ** N_QUBITS
ENTANGLER_PAIRS = ((0, 1), (2, 3), (4, 5), (6, 7), (1, 2), (3, 4), (5, 6), (7, 0))
LANE = 128
# Conservative per-kernel VMEM budget for tile sizing: fits v7x (64 MiB physical,
# 32 MiB default scoped) while still large enough to saturate HBM on v5e/v6e.
_VMEM_TILE_BUDGET = 24 << 20


def _round_up(n, m):
    return ((n + m - 1) // m) * m


# ---------------------------------------------------------------------------
# Host-side quantum-circuit precompute (numpy, complex128).
# ---------------------------------------------------------------------------
_I2 = np.eye(2, dtype=np.complex128)
_CNOT_AB = np.array([[1, 0, 0, 0], [0, 1, 0, 0], [0, 0, 0, 1], [0, 0, 1, 0]],
                    dtype=np.complex128)   # control = first wire of the pair (MSB)
_CNOT_BA = np.array([[1, 0, 0, 0], [0, 0, 0, 1], [0, 0, 1, 0], [0, 1, 0, 0]],
                    dtype=np.complex128)   # control = second wire of the pair


def _u3(theta, phi, delta):
    ct, st = np.cos(theta / 2.0), np.sin(theta / 2.0)
    return np.array(
        [[ct, -np.exp(1j * delta) * st],
         [np.exp(1j * phi) * st, np.exp(1j * (phi + delta)) * ct]],
        dtype=np.complex128)


def _ry(theta):
    ct, st = np.cos(theta / 2.0), np.sin(theta / 2.0)
    return np.array([[ct, -st], [st, ct]], dtype=np.complex128)


def _rz(theta):
    return np.array([[np.exp(-0.5j * theta), 0.0], [0.0, np.exp(0.5j * theta)]],
                    dtype=np.complex128)


def _u_su4_matrix(qw):
    """4x4 unitary of U_SU4 acting on (wire_a, wire_b); wire_a is the MSB of the pair."""
    w0, w1, w2, w3, w4, w5, w6 = [np.asarray(w, dtype=np.float64) for w in qw]
    g = np.kron(_u3(*w0), _u3(*w1))
    g = _CNOT_AB @ g
    g = np.kron(_ry(float(w2)), _rz(float(w3))) @ g
    g = _CNOT_BA @ g
    g = np.kron(_ry(float(w4)), _I2) @ g
    g = _CNOT_AB @ g
    g = np.kron(_u3(*w5), _u3(*w6)) @ g
    return g


def _apply_two_qubit(state, gate4, a, b):
    """Apply a 4x4 gate to wires (a, b) of a state shaped (2,)*8 [+ optional trailing batch]."""
    g = gate4.reshape(2, 2, 2, 2)
    st = np.tensordot(g, state, axes=[[2, 3], [a, b]])
    return np.moveaxis(st, [0, 1], [a, b])


def _pauliz_signs():
    k = np.arange(N_STATES)
    # PennyLane convention: wire 0 is the most-significant bit of the state index.
    return np.stack(
        [1.0 - 2.0 * ((k >> (N_QUBITS - 1 - i)) & 1) for i in range(N_QUBITS)]
    ).astype(np.float64)                                          # (8, 256)


def _expectation_matrices(gate4):
    """A[i] = Re(V^H D_i V); V = circuit acting on the 8 populated basis states."""
    cols = np.zeros((N_STATES, N_QUBITS), dtype=np.complex128)
    cols[np.arange(N_QUBITS), np.arange(N_QUBITS)] = 1.0
    st = cols.reshape((2,) * N_QUBITS + (N_QUBITS,))
    for a, b in ENTANGLER_PAIRS:
        st = _apply_two_qubit(st, gate4, a, b)
    v = st.reshape(N_STATES, N_QUBITS)                            # (256, 8)
    signs = _pauliz_signs()                                       # (8, 256)
    return np.stack(
        [np.real(v.conj().T @ (signs[i][:, None] * v)) for i in range(N_QUBITS)]
    )                                                             # (8, 8, 8)


# ---------------------------------------------------------------------------
# Parameters
# ---------------------------------------------------------------------------
def init_params(key, in_features, num_classes):
    """nn.Linear-style U(-1/sqrt(fan_in), 1/sqrt(fan_in)); quantum weights U(0, 2*pi).
    Linear weights are stored pre-transposed as (in_features, out_features)."""
    ks = jax.random.split(key, 11)

    def linear(kw, kb, fan_in, fan_out):
        bound = 1.0 / np.sqrt(fan_in)
        w = jax.random.uniform(kw, (fan_in, fan_out), jnp.float32, -bound, bound)
        b = jax.random.uniform(kb, (1, fan_out), jnp.float32, -bound, bound)
        return w, b

    w1, b1 = linear(ks[0], ks[1], in_features, N_QUBITS)
    w2, b2 = linear(ks[2], ks[3], N_QUBITS, num_classes)
    qshapes = [(3,), (3,), (), (), (), (3,), (3,)]                # weights_0 .. weights_6
    qw = tuple(jax.random.uniform(ks[4 + i], s, jnp.float32, 0.0, 2.0 * np.pi)
               for i, s in enumerate(qshapes))
    return (w1, b1, w2, b2, qw)


def fold_params(params):
    """Fold (quantum expectations + fc) into a single lane-aligned (8, 8*C_pad) matrix.

    m3_2d[k, j*C_pad + c] = M3[j, k, c] = sum_i A_i[j, k] * W2[i, c]    (c < num_classes)
    The spare lane `norm_lane = num_classes` of block j holds delta_{jk}, so the same
    h-weighted accumulation in the kernel also produces ||h||^2 for free.
    """
    w1, b1, w2, b2, qw = params
    a_mats = _expectation_matrices(_u_su4_matrix(qw))             # (8, 8, 8)  A_i[j, k]
    w2_64 = np.asarray(w2, np.float64)                            # (8, C)
    b2_64 = np.asarray(b2, np.float64)                            # (1, C)
    m3 = np.einsum("ijk,ic->jkc", a_mats, w2_64)                  # (8, 8, C)  M3[j, k, c]

    c = w2_64.shape[1]
    c_pad = _round_up(c + 1, LANE)        # lane-dense output + guaranteed spare norm lane
    norm_lane = c

    m3_blocks = np.zeros((N_QUBITS, N_QUBITS, c_pad), np.float64)  # [j, k, lane]
    m3_blocks[:, :, :c] = m3
    m3_blocks[np.arange(N_QUBITS), np.arange(N_QUBITS), norm_lane] = 1.0  # identity -> ||h||^2
    # rows = k, columns = j*c_pad + lane  (so one (TB,8)@(8,8*C_pad) matmul does everything)
    m3_2d = np.ascontiguousarray(
        np.transpose(m3_blocks, (1, 0, 2)).reshape(N_QUBITS, N_QUBITS * c_pad)
    ).astype(np.float32)

    b2_pad = np.zeros((1, c_pad), np.float32)
    b2_pad[:, :c] = b2_64.astype(np.float32)

    return {
        "w1": jnp.asarray(w1, jnp.float32),
        "b1": jnp.asarray(b1, jnp.float32),
        "m3": jnp.asarray(m3_2d),
        "b2": jnp.asarray(b2_pad),
        "num_classes": int(c),
        "norm_lane": int(norm_lane),
    }


# ---------------------------------------------------------------------------
# Pallas kernel + wrapper
# ---------------------------------------------------------------------------
def hqcnn_kernel(norm_lane, x_ref, w1_ref, b1_ref, m3_ref, b2_ref, o_ref):
    c_pad = o_ref.shape[-1]
    # Classical layer 1: (TB, d_in) @ (d_in, 8) + b1 (bf16 or f32 inputs, f32 accumulation).
    h = (jnp.dot(x_ref[...], w1_ref[...], preferred_element_type=jnp.float32)
         + b1_ref[...])                                            # (TB, 8) f32
    # One wide MXU matmul replaces 8 separate K=8 dots:
    #   g[:, j*c_pad + c] = sum_k h_k * M3[j, k, c]
    g = jnp.dot(h, m3_ref[...], preferred_element_type=jnp.float32)  # (TB, 8*c_pad)
    # Quadratic form via an h-weighted, lane-aligned accumulate (VPU):
    #   acc[:, c] = sum_j h_j * g[:, j*c_pad + c]
    acc = h[:, 0:1] * g[:, 0:c_pad]
    for j in range(1, N_QUBITS):
        acc = acc + h[:, j:j + 1] * g[:, j * c_pad:(j + 1) * c_pad]
    # ||h||^2 falls out of the same accumulation (identity block in lane `norm_lane`).
    # Clamp guards the (reference-undefined) h == 0 case and garbage tail rows of a
    # partial last block, which are never written back anyway.
    nrm = jnp.maximum(acc[:, norm_lane:norm_lane + 1], 1e-30)
    inv = pl.reciprocal(nrm, approx=True)          # EUP slot (effectively free)
    inv = inv * (2.0 - nrm * inv)                  # one Newton step -> f32-exact divide
    o_ref[...] = (acc * inv + b2_ref[...]).astype(o_ref.dtype)


def _choose_batch_tile(b0, d_in, c_pad, in_bytes, batch_tile=None):
    """Pick a batch tile: as big as a ~24 MiB VMEM budget allows (capped at 1024),
    multiple of 8, and >= 2 grid steps when the batch allows it (v7x megacore)."""
    if batch_tile is not None:
        tb = int(batch_tile)
    else:
        per_row = (2 * d_in * in_bytes            # x block, double-buffered
                   + 2 * c_pad * 4                # out block, double-buffered
                   + (N_QUBITS + 1) * c_pad * 4   # g + acc intermediates (f32)
                   + 16 * 4)                      # h + slack
        tb = min(1024, max(8, _VMEM_TILE_BUDGET // per_row))
        if b0 > 16:                               # ensure >= 2 blocks for the parallel axis
            tb = min(tb, -(-b0 // 2))
    tb = _round_up(max(8, min(tb, _round_up(b0, 8))), 8)
    return tb


def hqcnn_forward(x, fused, *, batch_tile=None, in_dtype=jnp.bfloat16):
    """x: (B, ...) -> (B, num_classes); mirrors HQCNN_Ang_noQP.forward.

    in_dtype: dtype used for the activation / w1 HBM stream (default bf16 halves the
    dominant HBM read; the matmul still accumulates in f32). Use jnp.float32 for a
    bit-faithful-to-f32 path.
    """
    w1, b1, m3_2d, b2 = fused["w1"], fused["b1"], fused["m3"], fused["b2"]
    num_classes = fused["num_classes"]
    norm_lane = fused["norm_lane"]
    in_dtype = jnp.dtype(in_dtype)

    b0 = x.shape[0]
    xf = x.reshape(b0, -1)                         # x.view(x.size(0), -1)
    # NOTE: ideally the producer of x already emits `in_dtype`; under jit this cast
    # fuses with the producer instead of being an extra HBM pass.
    if xf.dtype != in_dtype:
        xf = xf.astype(in_dtype)
    w1k = w1 if w1.dtype == in_dtype else w1.astype(in_dtype)

    d_in = xf.shape[1]
    c_pad = m3_2d.shape[1] // N_QUBITS
    in_bytes = in_dtype.itemsize

    tb = _choose_batch_tile(b0, d_in, c_pad, in_bytes, batch_tile)
    grid = (pl.cdiv(b0, tb),)                      # no host-side padding; Pallas masks
                                                   # the partial last block

    # Explicit VMEM budget (double-buffered x/out blocks + intermediates + weights).
    vmem_est = (2 * tb * d_in * in_bytes
                + 2 * tb * c_pad * 4
                + tb * ((N_QUBITS + 1) * c_pad + 16) * 4
                + d_in * N_QUBITS * in_bytes
                + N_QUBITS * N_QUBITS * c_pad * 4
                + 2 * c_pad * 4 + (1 << 16))
    vmem_limit = int(min(max(32 << 20, vmem_est * 5 // 4), 64 << 20))

    flops = (2 * b0 * d_in * N_QUBITS                      # layer-1 matmul
             + 2 * b0 * N_QUBITS * N_QUBITS * c_pad        # fused quadratic-form matmul
             + 3 * b0 * N_QUBITS * c_pad                   # weighted accumulate
             + 5 * b0 * c_pad)                             # scale + bias + Newton step
    bytes_accessed = int(b0 * d_in * in_bytes + d_in * N_QUBITS * in_bytes
                         + N_QUBITS * 4 + N_QUBITS * N_QUBITS * c_pad * 4
                         + 2 * c_pad * 4 + b0 * c_pad * 4)

    kernel = functools.partial(hqcnn_kernel, norm_lane)
    out = pl.pallas_call(
        kernel,
        out_shape=jax.ShapeDtypeStruct((b0, c_pad), jnp.float32),
        grid_spec=pltpu.PrefetchScalarGridSpec(
            num_scalar_prefetch=0,
            grid=grid,
            in_specs=[
                pl.BlockSpec((tb, d_in), lambda i: (i, 0)),     # batch-tiled activations
                pl.BlockSpec(w1k.shape, lambda i: (0, 0)),      # VMEM-resident weights
                pl.BlockSpec(b1.shape, lambda i: (0, 0)),
                pl.BlockSpec(m3_2d.shape, lambda i: (0, 0)),
                pl.BlockSpec(b2.shape, lambda i: (0, 0)),
            ],
            out_specs=pl.BlockSpec((tb, c_pad), lambda i: (i, 0)),  # 128-lane dense stores
        ),
        compiler_params=pltpu.CompilerParams(
            dimension_semantics=("parallel",),
            vmem_limit_bytes=vmem_limit,
        ),
        cost_estimate=pl.CostEstimate(flops=flops, transcendentals=b0,
                                      bytes_accessed=bytes_accessed),
    )(xf, w1k, b1, m3_2d, b2)
    return out[:, :num_classes]


# ---------------------------------------------------------------------------
# Pure numpy reference (per-sample statevector simulation, no folding)
# ---------------------------------------------------------------------------
def reference_forward(x, params, layer1_dtype=None):
    """If layer1_dtype is set, x and w1 are rounded to that dtype before layer 1
    (to verify the kernel's reduced-precision activation path bit-for-bit fairly)."""
    w1, b1, w2, b2, qw = params
    xf = np.asarray(x, dtype=np.float64).reshape(x.shape[0], -1)
    w1_64 = np.asarray(w1, np.float64)
    if layer1_dtype is not None:
        xf = np.asarray(jnp.asarray(xf, dtype=layer1_dtype)).astype(np.float64)
        w1_64 = np.asarray(jnp.asarray(w1_64, dtype=layer1_dtype)).astype(np.float64)
    h = xf @ w1_64 + np.asarray(b1, np.float64)
    gate4 = _u_su4_matrix(qw)
    signs = _pauliz_signs()
    z_rows = []
    for row in h:
        psi = np.zeros(N_STATES, dtype=np.complex128)
        psi[:N_QUBITS] = row
        psi = psi / np.linalg.norm(psi)
        st = psi.reshape((2,) * N_QUBITS)
        for a, b in ENTANGLER_PAIRS:
            st = _apply_two_qubit(st, gate4, a, b)
        probs = np.abs(st.reshape(N_STATES)) ** 2
        z_rows.append(signs @ probs)
    z = np.stack(z_rows)                                           # (B, 8)
    return z @ np.asarray(w2, np.float64) + np.asarray(b2, np.float64)


if __name__ == "__main__":
    in_features = 64                      # flattened 1x8x8 input
    num_classes = 10
    batch = 30                            # not a tile multiple: exercises the masked
                                          # partial last grid block (no host padding)

    key = jax.random.PRNGKey(0)
    k_x, k_p = jax.random.split(key)
    # 4-D input exercises the `x.view(x.size(0), -1)` flatten in forward().
    x = jax.random.normal(k_x, (batch, 1, 8, 8), jnp.float32)

    params = init_params(k_p, in_features, num_classes)
    fused = fold_params(params)

    # Exact path (f32 activation I/O) vs. the statevector reference.
    out_f32 = jax.block_until_ready(hqcnn_forward(x, fused, in_dtype=jnp.float32))
    ref = reference_forward(np.asarray(x), params)
    assert out_f32.shape == (batch, num_classes)
    err32 = float(np.max(np.abs(np.asarray(out_f32, np.float64) - ref)))
    assert np.allclose(np.asarray(out_f32, np.float64), ref, atol=1e-4, rtol=1e-3), err32

    # Default fast path (bf16 activation I/O) vs. a bf16-rounded layer-1 reference.
    out_bf16 = jax.block_until_ready(hqcnn_forward(x, fused))
    ref_bf = reference_forward(np.asarray(x), params, layer1_dtype=jnp.bfloat16)
    assert out_bf16.shape == (batch, num_classes)
    errbf = float(np.max(np.abs(np.asarray(out_bf16, np.float64) - ref_bf)))
    assert np.allclose(np.asarray(out_bf16, np.float64), ref_bf, atol=1e-3, rtol=1e-3), errbf

    print("KERNEL_OK")
</pallas_src>

<mosaic_0001>
module attributes {stable_mosaic.version = 11 : i64} {
  func.func @hqcnn_kernel(%arg0: i32, %arg1: memref<16x64xf32, #tpu.memory_space<vmem>>, %arg2: memref<64x8xf32, #tpu.memory_space<vmem>>, %arg3: memref<1x8xf32, #tpu.memory_space<vmem>>, %arg4: memref<8x1024xf32, #tpu.memory_space<vmem>>, %arg5: memref<1x128xf32, #tpu.memory_space<vmem>>, %arg6: memref<16x128xf32, #tpu.memory_space<vmem>>) attributes {dimension_semantics = [#tpu.dimension_semantics<parallel>], iteration_bounds = array<i64: 2>, scalar_prefetch = 0 : i64, scratch_operands = 0 : i64, tpu.core_type = #tpu.core_type<tc>, window_params = [{transform_indices = @transform_0, window_bounds = array<i64: 16, 64>}, {pipeline_mode = #tpu.pipeline_mode<synchronous>, transform_indices = @transform_1, window_bounds = array<i64: 64, 8>}, {pipeline_mode = #tpu.pipeline_mode<synchronous>, transform_indices = @transform_2, window_bounds = array<i64: 1, 8>}, {pipeline_mode = #tpu.pipeline_mode<synchronous>, transform_indices = @transform_3, window_bounds = array<i64: 8, 1024>}, {pipeline_mode = #tpu.pipeline_mode<synchronous>, transform_indices = @transform_4, window_bounds = array<i64: 1, 128>}, {transform_indices = @transform_5, window_bounds = array<i64: 16, 128>}]} {
    %c0 = arith.constant 0 : index
    %c0_0 = arith.constant 0 : index
    %0 = vector.load %arg1[%c0, %c0_0] : memref<16x64xf32, #tpu.memory_space<vmem>>, vector<16x64xf32>
    %c0_1 = arith.constant 0 : index
    %c0_2 = arith.constant 0 : index
    %1 = vector.load %arg2[%c0_1, %c0_2] : memref<64x8xf32, #tpu.memory_space<vmem>>, vector<64x8xf32>
    %cst = arith.constant dense<0.000000e+00> : vector<16x8xf32>
    %2 = tpu.matmul %0, %1, %cst {dimension_numbers = #tpu.dot_dimension_numbers<[1], [0], [0], [1], [0, 0, 1, 1], [], []>} : vector<16x64xf32>, vector<64x8xf32>, vector<16x8xf32> -> vector<16x8xf32>
    %c0_3 = arith.constant 0 : index
    %c0_4 = arith.constant 0 : index
    %3 = vector.load %arg3[%c0_3, %c0_4] : memref<1x8xf32, #tpu.memory_space<vmem>>, vector<1x8xf32>
    %4 = vector.broadcast %3 : vector<1x8xf32> to vector<16x8xf32>
    %5 = arith.addf %2, %4 : vector<16x8xf32>
    %c0_5 = arith.constant 0 : index
    %c0_6 = arith.constant 0 : index
    %6 = vector.load %arg4[%c0_5, %c0_6] : memref<8x1024xf32, #tpu.memory_space<vmem>>, vector<8x1024xf32>
    %cst_7 = arith.constant dense<0.000000e+00> : vector<16x1024xf32>
    %7 = tpu.matmul %5, %6, %cst_7 {dimension_numbers = #tpu.dot_dimension_numbers<[1], [0], [0], [1], [0, 0, 1, 1], [], []>} : vector<16x8xf32>, vector<8x1024xf32>, vector<16x1024xf32> -> vector<16x1024xf32>
    %8 = vector.extract_strided_slice %5 {offsets = [0, 0], sizes = [16, 1], strides = [1, 1]} : vector<16x8xf32> to vector<16x1xf32>
    %9 = vector.extract_strided_slice %7 {offsets = [0, 0], sizes = [16, 128], strides = [1, 1]} : vector<16x1024xf32> to vector<16x128xf32>
    %10 = vector.broadcast %8 : vector<16x1xf32> to vector<16x128xf32>
    %11 = arith.mulf %10, %9 : vector<16x128xf32>
    %12 = vector.extract_strided_slice %5 {offsets = [0, 1], sizes = [16, 1], strides = [1, 1]} : vector<16x8xf32> to vector<16x1xf32>
    %13 = vector.extract_strided_slice %7 {offsets = [0, 128], sizes = [16, 128], strides = [1, 1]} : vector<16x1024xf32> to vector<16x128xf32>
    %14 = vector.broadcast %12 : vector<16x1xf32> to vector<16x128xf32>
    %15 = arith.mulf %14, %13 : vector<16x128xf32>
    %16 = arith.addf %11, %15 : vector<16x128xf32>
    %17 = vector.extract_strided_slice %5 {offsets = [0, 2], sizes = [16, 1], strides = [1, 1]} : vector<16x8xf32> to vector<16x1xf32>
    %18 = vector.extract_strided_slice %7 {offsets = [0, 256], sizes = [16, 128], strides = [1, 1]} : vector<16x1024xf32> to vector<16x128xf32>
    %19 = vector.broadcast %17 : vector<16x1xf32> to vector<16x128xf32>
    %20 = arith.mulf %19, %18 : vector<16x128xf32>
    %21 = arith.addf %16, %20 : vector<16x128xf32>
    %22 = vector.extract_strided_slice %5 {offsets = [0, 3], sizes = [16, 1], strides = [1, 1]} : vector<16x8xf32> to vector<16x1xf32>
    %23 = vector.extract_strided_slice %7 {offsets = [0, 384], sizes = [16, 128], strides = [1, 1]} : vector<16x1024xf32> to vector<16x128xf32>
    %24 = vector.broadcast %22 : vector<16x1xf32> to vector<16x128xf32>
    %25 = arith.mulf %24, %23 : vector<16x128xf32>
    %26 = arith.addf %21, %25 : vector<16x128xf32>
    %27 = vector.extract_strided_slice %5 {offsets = [0, 4], sizes = [16, 1], strides = [1, 1]} : vector<16x8xf32> to vector<16x1xf32>
    %28 = vector.extract_strided_slice %7 {offsets = [0, 512], sizes = [16, 128], strides = [1, 1]} : vector<16x1024xf32> to vector<16x128xf32>
    %29 = vector.broadcast %27 : vector<16x1xf32> to vector<16x128xf32>
    %30 = arith.mulf %29, %28 : vector<16x128xf32>
    %31 = arith.addf %26, %30 : vector<16x128xf32>
    %32 = vector.extract_strided_slice %5 {offsets = [0, 5], sizes = [16, 1], strides = [1, 1]} : vector<16x8xf32> to vector<16x1xf32>
    %33 = vector.extract_strided_slice %7 {offsets = [0, 640], sizes = [16, 128], strides = [1, 1]} : vector<16x1024xf32> to vector<16x128xf32>
    %34 = vector.broadcast %32 : vector<16x1xf32> to vector<16x128xf32>
    %35 = arith.mulf %34, %33 : vector<16x128xf32>
    %36 = arith.addf %31, %35 : vector<16x128xf32>
    %37 = vector.extract_strided_slice %5 {offsets = [0, 6], sizes = [16, 1], strides = [1, 1]} : vector<16x8xf32> to vector<16x1xf32>
    %38 = vector.extract_strided_slice %7 {offsets = [0, 768], sizes = [16, 128], strides = [1, 1]} : vector<16x1024xf32> to vector<16x128xf32>
    %39 = vector.broadcast %37 : vector<16x1xf32> to vector<16x128xf32>
    %40 = arith.mulf %39, %38 : vector<16x128xf32>
    %41 = arith.addf %36, %40 : vector<16x128xf32>
    %42 = vector.extract_strided_slice %5 {offsets = [0, 7], sizes = [16, 1], strides = [1, 1]} : vector<16x8xf32> to vector<16x1xf32>
    %43 = vector.extract_strided_slice %7 {offsets = [0, 896], sizes = [16, 128], strides = [1, 1]} : vector<16x1024xf32> to vector<16x128xf32>
    %44 = vector.broadcast %42 : vector<16x1xf32> to vector<16x128xf32>
    %45 = arith.mulf %44, %43 : vector<16x128xf32>
    %46 = arith.addf %41, %45 : vector<16x128xf32>
    %47 = vector.extract_strided_slice %46 {offsets = [0, 10], sizes = [16, 1], strides = [1, 1]} : vector<16x128xf32> to vector<16x1xf32>
    %cst_8 = arith.constant 1.000000e-30 : f32
    %48 = vector.broadcast %cst_8 : f32 to vector<16x1xf32>
    %49 = arith.maximumf %47, %48 : vector<16x1xf32>
    %50 = tpu.reciprocal %49 {approx = true} : vector<16x1xf32> -> vector<16x1xf32>
    %51 = arith.mulf %49, %50 : vector<16x1xf32>
    %cst_9 = arith.constant 2.000000e+00 : f32
    %52 = vector.broadcast %cst_9 : f32 to vector<16x1xf32>
    %53 = arith.subf %52, %51 : vector<16x1xf32>
    %54 = arith.mulf %50, %53 : vector<16x1xf32>
    %55 = vector.broadcast %54 : vector<16x1xf32> to vector<16x128xf32>
    %56 = arith.mulf %46, %55 : vector<16x128xf32>
    %c0_10 = arith.constant 0 : index
    %c0_11 = arith.constant 0 : index
    %57 = vector.load %arg5[%c0_10, %c0_11] : memref<1x128xf32, #tpu.memory_space<vmem>>, vector<1x128xf32>
    %58 = vector.broadcast %57 : vector<1x128xf32> to vector<16x128xf32>
    %59 = arith.addf %56, %58 : vector<16x128xf32>
    %c0_12 = arith.constant 0 : index
    %c0_13 = arith.constant 0 : index
    %60 = vector.load %arg6[%c0_12, %c0_13] : memref<16x128xf32, #tpu.memory_space<vmem>>, vector<16x128xf32>
    tpu.vector_store %arg6[%c0_12, %c0_13], %59 {strides = array<i32>} : memref<16x128xf32, #tpu.memory_space<vmem>>, vector<16x128xf32>,
    return
  }
  func.func @transform_0(%arg0: i32) -> (i32, i32) {
    %c0_i32 = arith.constant 0 : i32
    %c0_i32_0 = arith.constant 0 : i32
    return %arg0, %c0_i32 : i32, i32
  }
  func.func @transform_1(%arg0: i32) -> (i32, i32) {
    %c0_i32 = arith.constant 0 : i32
    %c0_i32_0 = arith.constant 0 : i32
    %c0_i32_1 = arith.constant 0 : i32
    return %c0_i32, %c0_i32_0 : i32, i32
  }
  func.func @transform_2(%arg0: i32) -> (i32, i32) {
    %c0_i32 = arith.constant 0 : i32
    %c0_i32_0 = arith.constant 0 : i32
    %c0_i32_1 = arith.constant 0 : i32
    return %c0_i32, %c0_i32_0 : i32, i32
  }
  func.func @transform_3(%arg0: i32) -> (i32, i32) {
    %c0_i32 = arith.constant 0 : i32
    %c0_i32_0 = arith.constant 0 : i32
    %c0_i32_1 = arith.constant 0 : i32
    return %c0_i32, %c0_i32_0 : i32, i32
  }
  func.func @transform_4(%arg0: i32) -> (i32, i32) {
    %c0_i32 = arith.constant 0 : i32
    %c0_i32_0 = arith.constant 0 : i32
    %c0_i32_1 = arith.constant 0 : i32
    return %c0_i32, %c0_i32_0 : i32, i32
  }
  func.func @transform_5(%arg0: i32) -> (i32, i32) {
    %c0_i32 = arith.constant 0 : i32
    %c0_i32_0 = arith.constant 0 : i32
    return %arg0, %c0_i32 : i32, i32
  }
}

</mosaic_0001>

<bundles_post_ra>
// kernel: tpu_custom_call.1
= control target key start
LH: loop header
LB: loop body
LE: loop exit
PB: predicated region body
PF: predicated region fallthrough
CT: control target
= control target key end

     0   :  { %10 = vsyncpa [#allocation3], 0  ;;  %s1381_s0 = inlined_call_operand.hbm [shape: f32[30,64], index: 0, kind: input, shape index: {}]   ;;  %s1382_s1 = inlined_call_operand.vmem [shape: f32[64,8], index: 1, kind: input, shape index: {}]   ;;  %s1383_s2 = inlined_call_operand.vmem [shape: f32[1,8], index: 2, kind: input, shape index: {}]   ;;  %s1384_s3 = inlined_call_operand.vmem [shape: f32[8,1024], index: 3, kind: input, shape index: {}]   ;;  %s1385_s4 = inlined_call_operand.vmem [shape: f32[1,128], index: 4, kind: input, shape index: {}]   ;;  %s1386_s5 = inlined_call_operand.hbm [shape: f32[30,128], index: 5, kind: output, shape index: {}]  }
   0x1   :  { %12 = vsyncpa [#allocation3 + $0x1], 0 }
   0x2   :  { %13 = vsyncpa [#allocation4], 0 }
   0x3   :  { %15 = vsyncpa [#allocation4 + $0x1], 0  ;;  %s1159_s18 = smov 0   ;;  %s1161_s19 = smov 0  }
   0x4   :  { %s1163_s20 = smov 0   ;;  %s1165_s21 = smov 0  }
   0x5 LB: > { %s1180_s22 = sadd.s32 4294967295, %s1111_s21   ;;  %s881_s23 = sadd.s32 4294967294, %s1111_s21   ;;  %s1111_s21 = sphi %s1165_s21, %s1401_s21   ;;  %s1107_s20 = sphi %s1163_s20, %s1400_s20   ;;  %s1103_s19 = sphi %s1161_s19, %s1399_s19   ;;  %s1099_s18 = sphi %s1159_s18, %s1398_s18  }
   0x6   : > { %s1184_s24 = sadd.s32 1, %s1111_s21   ;;  %s28_s25 = sadd.s32 1, %s1107_s20 }
   0x7   : > { %s25_s26 = ssub.s32 %s1111_s21, %s1184_s24  ;;  %p35_p0 = scmp.ne.s32.totalorder %s1107_s20, %s1103_s19 }
   0x8   : > { %p26_p1 = scmp.eq.s32.totalorder %s25_s26, 0  ;;  %p36_p2 = scmp.eq.s32.totalorder %s1111_s21, 0 }
   0x9   : > { %p41_p3 = scmp.ne.s32.totalorder %s1103_s19, %s1099_s18  ;;  %p42_p4 = scmp.eq.s32.totalorder %s1180_s22, 0 }
   0xa   : > { %s1196_s27 = scalar_select %p26_p1, %s1107_s20, %s28_s25  }
   0xb   : > { %p1198_p5 = por %p36_p2, %p35_p0  ;;  %p1202_p6 = por %p42_p4, %p41_p3 }
   0xc   : > { %p149_p7 = scmp.eq.s32.totalorder %s1180_s22, 1  ;;  %p155_p8 = scmp.eq.s32.totalorder %s881_s23, 1 }
   0xd   : > { %s1390_s29 = scalar_select %p1202_p6, 1, 0 }
   0xe   : > { %p950_p10 = scmp.lt.s32.totalorder %s1111_s21, 2  ;;  %p1209_p11 = por %p149_p7, %p35_p0 }
   0xf   : > { %p1213_p12 = por %p155_p8, %p41_p3  ;;  %s187_s7 = sand.u32 1, %s1107_s20  }
  0x10   : > { %s1391_s30 = scalar_select %p1209_p11, 1, 0 }
  0x11   : > { %s1392_s6 = scalar_select %p1213_p12, 1, 0 }
  0x12   : > { %s907_s8 = sshll.u32 %s1111_s21, 8  ;;  %s884_s9 = sshll.u32 %s187_s7, 4 }
  0x13   : > { %s1222_s12 = scalar_lea.hbm %s1381_s0, %s907_s8  ;;  %s191_s13 = scalar_lea.vmem [#allocation2], %s884_s9 }
  0x14   : > { %s198_s14 = sshll.u32 %s191_s13, 4  ;;  %p1226_p13 = pnand %p950_p10, %p1198_p5  ;;  %s1230_s14 = int_to_ptr.vmem [resolvable:$true] %s198_s14 }
  0x15   : > { %s1232_s16 = scalar_lea.sflag [#allocation3], %s187_s7  ;;  %s1019_s17 = scalar_lea.hbm %s1222_s12, 256 }
  0x16   : > { %p1020_p0 = scmp.ne.s32.totalorder %s1222_s12, %s1019_s17  ;;  %p1021_p1 = pneg %p1226_p13 }
  0x17   : > { %s1024_s26 = scalar_lea.hbm %s1381_s0, 512  ;;  %p1025_p4 = scmp.lt.s32.totalorder %s1222_s12, %s1381_s0 }
  0x18   : > { %p1022_p2 = pnand %p1021_p1, %p1020_p0  ;;  %p1026_p5 = scmp.lt.s32.totalorder %s1024_s26, %s1019_s17 }
  0x1a   : > { %p1023_p3 = pneg %p1022_p2  ;;  %p1027_p7 = por %p1026_p5, %p1025_p4 }
  0x1c   : > { %p1028_p8 = pnand %p1027_p7, %p1023_p3 }
  0x1e   : > { %1031 = shalt.err (!%p1028_p8)
}
  0x1f   : > { %s1032_s7 = scalar_lea.vmem %s1230_s14, 256  ;;  %s1113_s9 = smov [#allocation2]  }
  0x20   : > { %p1033_p10 = scmp.ne.s32.totalorder %s1230_s14, %s1032_s7  ;;  %s1037_s10 = sshll.u32 %s1113_s9, 4  ;;  %s1038_s10 = int_to_ptr.vmem [resolvable:$false] %s1037_s10 }
  0x21   : > { %s1039_s11 = scalar_lea.vmem %s1038_s10, 512  ;;  %p1040_p2 = scmp.lt.s32.totalorder %s1230_s14, %s1038_s10 }
  0x22   : > { %p1035_p9 = pnand %p1033_p10, %p1021_p1  ;;  %p1041_p12 = scmp.lt.s32.totalorder %s1039_s11, %s1032_s7 }
  0x24   : > { %p1036_p0 = pneg %p1035_p9  ;;  %p1042_p11 = por %p1041_p12, %p1040_p2 }
  0x26   : > { %p1043_p6 = pnand %p1042_p11, %p1036_p0 }
  0x28   : > { %1046 = shalt.err (!%p1043_p6)
}
  0x29   : > { %s1114_s13 = smov 128   ;;  %s1115_s17 = smov 8  }
  0x2a   : > { %945 = dma.hbm_to_vmem [thread:$0]  (!%p1226_p13), %s1222_s12, 256, %s1230_s14, %s1232_s16, %s1114_s13, %s1114_s13, %s1115_s17  }
  0x2b   : > { %p887_p9 = scmp.ge.s32.totalorder %s1111_s21, 1  ;;  %p206_p1 = scmp.lt.s32.totalorder %s1111_s21, 3 }
  0x2d   : > { %p207_p3 = pnand %p887_p9, %p206_p1 }
  0x2e   : > { %s1256_s23 = sand.u32 (!%p207_p3), 1, %s1103_s19   ;;  %p1394_p6 = scmp.ne.s32.totalorder (!%p207_p3), %s1390_s29, 0 }
  0x2f   : > { %210 = sbr.rel (%p207_p3) target bundleno = 655 (0x28f), region = 40  ;;  %s888_s25 = sshll.u32 (!%p207_p3), %s1256_s23, 4 }
  0x30   : > { %s213_s26 = scalar_lea.sflag (!%p207_p3), [#allocation3], %s1256_s23  ;;  %s216_s28 = scalar_lea.vmem (!%p207_p3), [#allocation2], %s888_s25 }
  0x34   : > { %1090 = dma.done.wait (%p1394_p6), %s213_s26, 256  }
  0x35   : > { %1092 = vsyncadd (%p1394_p6), %s213_s26, 4294967040  ;;  %v254_v0 = vld [vmem:[%s1382_s1 + $0x38] sm:$0xff]  ;;  %v253_v1 = vld [vmem:[%s1382_s1 + $0x30] sm:$0xff]  ;;  %vm262_vm0 = vcmask 523264   ;;  %v1116_v10 = vmov 1   ;;  %v1117_v11 = vmov 0  }
  0x36   : > { %919 = vmatprep.subr.mxu0 %v254_v0  ;;  %v252_v2 = vld [vmem:[%s1382_s1 + $0x28] sm:$0xff]  ;;  %v245_v3 = vld [vmem:[%s216_s28] sm:$0xff]  ;;  %v250_v5 = vld [vmem:[%s1382_s1 + $0x18] sm:$0xff]  ;;  %999 = vset.pattern.permute.xlu1 %v1116_v10  ;;  %v1118_v17 = vmov 0.0   ;;  %vm352_vm1 = vcmask 64512   ;;  %v1119_v24 = vmov 2  }
  0x37   : > { %920 = vmatpush3.msra.mxu0 %v254_v0  ;;  %935 = vmatprep.mubr.msk.f32.mxu0 %vm262_vm0, %v245_v3  ;;  %v251_v4 = vld [vmem:[%s1382_s1 + $0x20] sm:$0xff]  ;;  %v249_v6 = vld [vmem:[%s1382_s1 + $0x10] sm:$0xff]  ;;  %v248_v7 = vld [vmem:[%s1382_s1 + $0x8] sm:$0xff]  ;;  %v1120_v25 = vmov 3   ;;  %v1121_v27 = vmov 4   ;;  %v1122_v29 = vmov 5  }
  0x38   : > { %921 = vmatprep.subr.mxu0 %v253_v1  ;;  %v247_v8 = vld [vmem:[%s1382_s1] sm:$0xff]  ;;  %v246_v9 = vld [vmem:[%s216_s28 + $0x8] sm:$0xff]  ;;  %998 = vset.pattern.permute.xlu0 %v1117_v11  ;;  %v350_v16 = vld [vmem:[%s1384_s3 + $0x30] sm:$0xff]  ;;  %v1123_v30 = vmov 6   ;;  %v1124_v31 = vmov 7   ;;  %v1125_v32 = vmov 10  }
  0x39   : > { %922 = vmatpush3.msra.mxu0 %v253_v1  ;;  %v345_v12 = vld [vmem:[%s1384_s3 + $0x8] sm:$0xff]  ;;  %v351_v13 = vld [vmem:[%s1384_s3 + $0x38] sm:$0xff]  ;;  %v344_v14 = vld [vmem:[%s1384_s3] sm:$0xff]  ;;  %423 = vmatprep.mubr.f32.mxu1 %v1118_v17  ;;  %s242_s28 = scalar_lea.vmem [#allocation5], %s888_s25  ;;  %s908_s13 = sshll.u32 %s1180_s22, 8 }
  0x3a   : > { %923 = vmatprep.subr.mxu0 %v252_v2  ;;  %389 = vmatprep.subr.mxu1 %v345_v12  ;;  %v347_v15 = vld [vmem:[%s1384_s3 + $0x18] sm:$0xff]  ;;  %v890_v18 = vld [vmem:[%s1383_s2] ss:$0 sm:$0xff]  ;;  %v346_v23 = vld [vmem:[%s1384_s3 + $0x10] sm:$0xff]  ;;  %s808_s11 = sshll.u32 %s242_s28, 4  ;;  %s1338_s12 = scalar_lea.hbm %s1386_s5, %s908_s13  ;;  %s1333_s11 = int_to_ptr.vmem [resolvable:$true] %s808_s11 }
  0x3b   : > { %924 = vmatpush3.msra.mxu0 %v252_v2  ;;  %390 = vmatpush1.msra.mxu1 %v344_v14  ;;  %v349_v26 = vld [vmem:[%s1384_s3 + $0x28] sm:$0xff]  ;;  %v348_v28 = vld [vmem:[%s1384_s3 + $0x20] sm:$0xff]  ;;  %s795_s14 = scalar_lea.sflag [#allocation4], %s1256_s23  ;;  %s1047_s25 = scalar_lea.vmem %s1333_s11, 256 }
  0x3c   : > { %925 = vmatprep.subr.mxu0 %v251_v4  ;;  %466 = vmatprep.subr.mxu1 %v347_v15  ;;  %p1048_p11 = scmp.ne.s32.totalorder %s1333_s11, %s1047_s25  ;;  %p1395_p12 = scmp.ne.s32.totalorder %s1391_s30, 0 }
  0x3d   : > { %926 = vmatpush3.msra.mxu0 %v251_v4  ;;  %s1126_s22 = smov [#allocation5]  }
  0x3e   : > { %927 = vmatprep.subr.mxu0 %v250_v5  ;;  %p1049_p13 = pnand %p1048_p11, %p1395_p12  ;;  %s1051_s15 = sshll.u32 %s1126_s22, 4  ;;  %s1052_s15 = int_to_ptr.vmem [resolvable:$false] %s1051_s15 }
  0x3f   : > { %928 = vmatpush3.msra.mxu0 %v250_v5  ;;  %s1053_s16 = scalar_lea.vmem %s1052_s15, 512  ;;  %p1054_p5 = scmp.lt.s32.totalorder %s1333_s11, %s1052_s15 }
  0x40   : > { %929 = vmatprep.subr.mxu0 %v249_v6  ;;  %p1050_p4 = pneg %p1049_p13  ;;  %p1055_p7 = scmp.lt.s32.totalorder %s1053_s16, %s1047_s25 }
  0x41   : > { %930 = vmatpush3.msra.mxu0 %v249_v6 }
  0x42   : > { %931 = vmatprep.subr.mxu0 %v248_v7  ;;  %p1056_p8 = por %p1055_p7, %p1054_p5 }
  0x43   : > { %932 = vmatpush3.msra.mxu0 %v248_v7 }
  0x44   : > { %933 = vmatprep.subr.mxu0 %v247_v8  ;;  %p1057_p10 = pnand %p1056_p8, %p1050_p4 }
  0x45   : > { %934 = vmatpush3.msra.mxu0 %v247_v8 }
  0x46   : > { %936 = vmatmul.mubr.msk.f32.vlgmr.msra.gmra.mxu0 %vm262_vm0, %v246_v9  ;;  %620 = vmatprep.subr.mxu0 %v351_v13 }
  0x47   : > { %621 = vmatpush1.msra.mxu0 %v350_v16  ;;  %654 = vmatprep.mubr.f32.mxu0 %v1118_v17 }
 0x106   : > { %v937_v19 = vpop.f32.mrf.mxu0 }
 0x107   : > { %v341_v20 = vadd.f32 %v937_v19, %v890_v18 }
 0x108   : > { %v335_v21 = vpop.f32.mrf.mxu0 }
 0x109   : > { %v336_v22 = vadd.f32 %v890_v18, %v335_v21  ;;  %682 = vperm.xlu1 %999, %v341_v20   ;;  %672 = vperm.xlu0 %998, %v341_v20  }
 0x10b   : > { %893 = vmatmul.mubr.msk.f32.vlgmr.msra.gmra.mxu1 %vm352_vm1, %v336_v22  ;;  %899 = vmatmul.mubr.msk.f32.vlgmr.msra.gmra.mxu0 %vm352_vm1, %v336_v22 }
 0x10c   : > { %467 = vmatpush1.msra.mxu1 %v346_v23  ;;  %429 = vmatprep.mubr.f32.mxu1 %v1118_v17 }
 0x10d   : > { %1000 = vset.pattern.permute.xlu1 %v1119_v24  ;;  %1001 = vset.pattern.permute.xlu0 %v1120_v25 }
 0x10e   : > { %694 = vperm.xlu1 %1000, %v341_v20   ;;  %706 = vperm.xlu0 %1001, %v341_v20  }
 0x10f   : > { %660 = vmatprep.mubr.f32.mxu0 %v1118_v17  ;;  %894 = vmatmul.mubr.msk.f32.gmra.mxu1 %vm352_vm1, %v341_v20 }
 0x110   : > { %900 = vmatmul.mubr.msk.f32.gmra.mxu0 %vm352_vm1, %v341_v20  ;;  %500 = vmatprep.mubr.f32.mxu1 %v1118_v17 }
 0x111   : > { %543 = vmatprep.subr.mxu1 %v349_v26 }
 0x112   : > { %1002 = vset.pattern.permute.xlu1 %v1121_v27  ;;  %1004 = vset.pattern.permute.xlu0 %v1117_v11 }
 0x113   : > { %718 = vperm.xlu1 %1002, %v341_v20   ;;  %668 = vperm.xlu0 %1004, %v336_v22  }
 0x114   : > { %895 = vmatmul.mubr.msk.f32.vlgmr.msra.gmra.mxu1 %vm352_vm1, %v336_v22 }
 0x115   : > { %544 = vmatpush1.msra.mxu1 %v348_v28  ;;  %506 = vmatprep.mubr.f32.mxu1 %v1118_v17 }
 0x117   : > { %1003 = vset.pattern.permute.xlu1 %v1122_v29  ;;  %1006 = vset.pattern.permute.xlu0 %v1119_v24 }
 0x118   : > { %896 = vmatmul.mubr.msk.f32.gmra.mxu1 %vm352_vm1, %v341_v20  ;;  %730 = vperm.xlu1 %1003, %v341_v20  }
 0x119   : > { %690 = vperm.xlu0 %1006, %v336_v22   ;;  %577 = vmatprep.mubr.f32.mxu1 %v1118_v17 }
 0x11c   : > { %897 = vmatmul.mubr.msk.f32.vlgmr.msra.gmra.mxu1 %vm352_vm1, %v336_v22  ;;  %1005 = vset.pattern.permute.xlu1 %v1116_v10 }
 0x11d   : > { %1009 = vset.pattern.permute.xlu0 %v1122_v29  ;;  %678 = vperm.xlu1 %1005, %v336_v22  }
 0x11e   : > { %726 = vperm.xlu0 %1009, %v336_v22   ;;  %583 = vmatprep.mubr.f32.mxu1 %v1118_v17 }
 0x120   : > { %898 = vmatmul.mubr.msk.f32.gmra.mxu1 %vm352_vm1, %v341_v20 }
 0x121   : > { %1007 = vset.pattern.permute.xlu1 %v1120_v25 }
 0x122   : > { %1010 = vset.pattern.permute.xlu0 %v1123_v30  ;;  %702 = vperm.xlu1 %1007, %v336_v22  }
 0x123   : > { %742 = vperm.xlu0 %1010, %v341_v20  }
 0x126   : > { %1008 = vset.pattern.permute.xlu1 %v1121_v27 }
 0x127   : > { %714 = vperm.xlu1 %1008, %v336_v22   ;;  %1013 = vset.pattern.permute.xlu0 %v1125_v32 }
 0x12b   : > { %1011 = vset.pattern.permute.xlu1 %v1123_v30 }
 0x12c   : > { %738 = vperm.xlu1 %1011, %v336_v22  }
 0x130   : > { %1012 = vset.pattern.permute.xlu1 %v1124_v31 }
 0x131   : > { %750 = vperm.xlu1 %1012, %v336_v22  }
 0x135   : > { %754 = vperm.xlu1 %1012, %v341_v20  }
 0x139   : > { %1014 = vset.pattern.permute.xlu1 %v1125_v32 }
 0x184   : > { %v683_v33 = vpop.permute.xlu1 %682  ;;  %v673_v37 = vpop.permute.xlu0 %672 }
 0x189   : > { %v695_v34 = vpop.permute.xlu1 %694  ;;  %v707_v39 = vpop.permute.xlu0 %706 }
 0x18e   : > { %v719_v35 = vpop.permute.xlu1 %718  ;;  %v669_v43 = vpop.permute.xlu0 %668 }
 0x193   : > { %v731_v36 = vpop.permute.xlu1 %730 }
 0x194   : > { %v691_v48 = vpop.permute.xlu0 %690 }
 0x198   : > { %v679_v38 = vpop.permute.xlu1 %678 }
 0x199   : > { %v727_v6 = vpop.permute.xlu0 %726 }
 0x19d   : > { %v703_v41 = vpop.permute.xlu1 %702 }
 0x19e   : > { %v743_v22 = vpop.permute.xlu0 %742 }
 0x1a2   : > { %v715_v46 = vpop.permute.xlu1 %714 }
 0x1a7   : > { %v739_v57 = vpop.permute.xlu1 %738 }
 0x1ac   : > { %v751_v8 = vpop.permute.xlu1 %750 }
 0x1b0   : > { %v755_v27 = vpop.permute.xlu1 %754 }
 0x1cb   : > { %v425_v40 = vpop.f32.mrf.mxu1  ;;  %v656_v55 = vpop.f32.mrf.mxu0 }
 0x1cc   : > { %v675_v50 = vmul.f32 %v669_v43, %v425_v40  ;;  %v745_v13 = vmul.f32 %v739_v57, %v656_v55 }
 0x1cd   : > { %v427_v42 = vpop.f32.mrf.mxu1  ;;  %v658_v0 = vpop.f32.mrf.mxu0 }
 0x1ce   : > { %v685_v47 = vmul.f32 %v679_v38, %v427_v42  ;;  %v757_v18 = vmul.f32 %v751_v8, %v658_v0 }
 0x1cf   : > { %v431_v44 = vpop.f32.mrf.mxu1 }
 0x1d0   : > { %v687_v53 = vadd.f32 %v685_v47, %v675_v50  ;;  %v676_v58 = vmul.f32 %v673_v37, %v431_v44  ;;  %v662_v11 = vpop.f32.mrf.mxu0 }
 0x1d1   : > { %v433_v45 = vpop.f32.mrf.mxu1  ;;  %v746_v24 = vmul.f32 %v743_v22, %v662_v11 }
 0x1d2   : > { %v686_v54 = vmul.f32 %v683_v33, %v433_v45  ;;  %v664_v23 = vpop.f32.mrf.mxu0 }
 0x1d3   : > { %v758_v28 = vmul.f32 %v755_v27, %v664_v23 }
 0x1d4   : > { %v502_v49 = vpop.f32.mrf.mxu1  ;;  %v688_v63 = vadd.f32 %v686_v54, %v676_v58 }
 0x1d5   : > { %v697_v51 = vmul.f32 %v691_v48, %v502_v49 }
 0x1d6   : > { %v504_v52 = vpop.f32.mrf.mxu1 }
 0x1d7   : > { %v699_v59 = vadd.f32 %v697_v51, %v687_v53  ;;  %v709_v60 = vmul.f32 %v703_v41, %v504_v52  ;;  %v901_v41 = vld [vmem:[%s1385_s4] ss:$0 sm:$0xff] }
 0x1d8   : > { %v508_v56 = vpop.f32.mrf.mxu1 }
 0x1d9   : > { %v698_v61 = vmul.f32 %v695_v34, %v508_v56  ;;  %v711_v2 = vadd.f32 %v709_v60, %v699_v59 }
 0x1da   : > { %v510_v62 = vpop.f32.mrf.mxu1 }
 0x1db   : > { %v700_v3 = vadd.f32 %v698_v61, %v688_v63  ;;  %v710_v4 = vmul.f32 %v707_v39, %v510_v62 }
 0x1dc   : > { %v579_v1 = vpop.f32.mrf.mxu1 }
 0x1dd   : > { %v721_v5 = vmul.f32 %v715_v46, %v579_v1  ;;  %v712_v14 = vadd.f32 %v710_v4, %v700_v3 }
 0x1de   : > { %v581_v7 = vpop.f32.mrf.mxu1 }
 0x1df   : > { %v723_v9 = vadd.f32 %v721_v5, %v711_v2  ;;  %v733_v10 = vmul.f32 %v727_v6, %v581_v7 }
 0x1e0   : > { %v585_v12 = vpop.f32.mrf.mxu1 }
 0x1e1   : > { %v735_v15 = vadd.f32 %v733_v10, %v723_v9  ;;  %v722_v16 = vmul.f32 %v719_v35, %v585_v12 }
 0x1e2   : > { %v587_v17 = vpop.f32.mrf.mxu1 }
 0x1e3   : > { %v747_v19 = vadd.f32 %v745_v13, %v735_v15  ;;  %v724_v20 = vadd.f32 %v722_v16, %v712_v14  ;;  %v734_v21 = vmul.f32 %v731_v36, %v587_v17 }
 0x1e5   : > { %v759_v25 = vadd.f32 %v757_v18, %v747_v19  ;;  %v736_v26 = vadd.f32 %v734_v21, %v724_v20 }
 0x1e7   : > { %v748_v29 = vadd.f32 %v746_v24, %v736_v26  ;;  %v761_v30 = vmax.f32 %v759_v25, 1e-30 }
 0x1e9   : > { %v760_v31 = vadd.f32 %v758_v28, %v748_v29  ;;  %1015 = vrcp.f32 %v761_v30 }
 0x1eb   : > { %v762_v32 = vmax.f32 %v760_v31, 1e-30 }
 0x1ed   : > { %1017 = vrcp.f32 %v762_v32 }
 0x1f6   : > { %v1016_v33 = vpop.eup %1015 }
 0x1f7   : > { %v765_v34 = vmul.f32 %v1016_v33, %v761_v30 }
 0x1f9   : > { %v767_v35 = vsub.f32 2.0, %v765_v34 }
 0x1fa   : > { %v1018_v37 = vpop.eup %1017 }
 0x1fb   : > { %v769_v36 = vmul.f32 %v1016_v33, %v767_v35  ;;  %v766_v38 = vmul.f32 %v1018_v37, %v762_v32 }
 0x1fd   : > { %773 = vperm.xlu0 %1013, %v769_v36   ;;  %v768_v39 = vsub.f32 2.0, %v766_v38 }
 0x1ff   : > { %v770_v40 = vmul.f32 %v1018_v37, %v768_v39 }
 0x201   : > { %778 = vperm.xlu1 %1014, %v770_v40  }
 0x278   : > { %v774_v42 = vpop.permute.xlu0 %773 }
 0x279   : > { %v781_v43 = vmul.f32 %v774_v42, %v759_v25 }
 0x27b   : > { %v790_v44 = vadd.f32 %v901_v41, %v781_v43 }
 0x27c   : > { %v779_v45 = vpop.permute.xlu1 %778 }
 0x27d   : > { %792 = vst [vmem:[%s242_s28] sm:$0xff] %v790_v44  ;;  %v782_v46 = vmul.f32 %v779_v45, %v760_v31 }
 0x27f   : > { %v791_v47 = vadd.f32 %v901_v41, %v782_v46 }
 0x281   : > { %793 = vst [vmem:[%s242_s28 + $0x8] sm:$0xff] %v791_v47 }
 0x282   : > { %1060 = shalt.err (!%p1057_p10)
}
 0x283   : > { %s1061_s8 = scalar_lea.hbm %s1338_s12, 256  ;;  %s1065_s9 = scalar_lea.hbm %s1386_s5, 512 }
 0x284   : > { %p1062_p0 = scmp.ne.s32.totalorder %s1338_s12, %s1061_s8  ;;  %p1066_p1 = scmp.lt.s32.totalorder %s1338_s12, %s1386_s5 }
 0x285   : > { %p1067_p3 = scmp.lt.s32.totalorder %s1065_s9, %s1061_s8 }
 0x286   : > { %p1063_p2 = pnand %p1062_p0, %p1395_p12 }
 0x287   : > { %p1068_p6 = por %p1067_p3, %p1066_p1 }
 0x288   : > { %p1064_p9 = pneg %p1063_p2 }
 0x28a   : > { %p1069_p11 = pnand %p1068_p6, %p1064_p9 }
 0x28c   : > { %1072 = shalt.err (!%p1069_p11)
}
 0x28d   : > { %s1127_s13 = smov 128   ;;  %s1128_s17 = smov 8  }
 0x28e   : > { %940 = dma.vmem_to_hbm [thread:$0]  (%p1395_p12), %s1333_s11, 256, %s1338_s12, %s795_s14, %s1127_s13, %s1127_s13, %s1128_s17  }
 0x28f PF: > { %s823_s26 = sand.u32 1, %s1099_s18   ;;  %p1396_p13 = scmp.ne.s32.totalorder %s1392_s6, 0 }
 0x290   : > { %p1397_p4 = scmp.ge.s32.totalorder %s1111_s21, 2  ;;  %s824_s25 = scalar_lea.sflag [#allocation4], %s823_s26 }
 0x292   : > { %p947_p5 = pnand %p1397_p4, %p1396_p13 }
 0x294   : > { %p948_p7 = pneg %p947_p5 }
 0x296   : > { %1094 = dma.done.wait (%p948_p7), %s824_s25, 256  }
 0x297   : > { %1096 = vsyncadd (%p948_p7), %s824_s25, 4294967040  ;;  %p18_p8 = scmp.ge.s32.totalorder %s1184_s24, 4   ;;  %s1398_s18 = smov %s1103_s19 }
 0x298   : > { %s1399_s19 = smov %s1107_s20  ;;  %s1400_s20 = smov %s1196_s27 }
 0x299   : > { %s1401_s21 = smov %s1184_s24  ;;  %20 = sbr.rel (!%p18_p8) target bundleno = 5 (0x5), region = 85 }
 0x29e   :  { %829 = vsyncpa [#allocation3], 1 }
 0x29f   :  { %831 = vsyncpa [#allocation3 + $0x1], 1 }
 0x2a0   :  { %832 = vsyncpa [#allocation4], 1 }
 0x2a1   :  { %834 = vsyncpa [#allocation4 + $0x1], 1 }

</bundles_post_ra>
